<compile_context>
chip_gen: v5e
topology: v5e:2x2
jax: 0.10.0
libtpu: 0.0.40
codegen_flags: <defaults>
</compile_context>

<pallas_src>
import functools

import jax
import jax.numpy as jnp
from jax.experimental import pallas as pl
from jax.experimental.pallas import tpu as pltpu

BN_EPS = 1e-5       # nn.BatchNorm1d default
L2_EPS = 1e-12      # F.normalize default
LANE = 128


def _single_modal_kernel(x_ref, wt_ref, b_ref, pool_n_ref, fc_n_ref):
    # x_ref: (TB, S, C)  channels-last feature-map block
    x = x_ref[...]

    # AdaptiveAvgPool2d((1,1)) + flatten -> (TB, C): sublane reduce over S.
    pool = jnp.mean(x, axis=1)

    # FeatureBlock (Linear + folded eval-BN): one MXU matmul, lane-dense RHS.
    fc = jnp.dot(pool, wt_ref[...], preferred_element_type=jnp.float32)
    fc = fc + b_ref[...]                                      # (TB, HdP)

    # l2norm along dim=1 (F.normalize with clamp_min(1e-12)).
    pool_nrm = jnp.maximum(
        jnp.sqrt(jnp.sum(pool * pool, axis=1, keepdims=True)), L2_EPS)
    fc_nrm = jnp.maximum(
        jnp.sqrt(jnp.sum(fc * fc, axis=1, keepdims=True)), L2_EPS)

    pool_n_ref[...] = (pool / pool_nrm).astype(pool_n_ref.dtype)
    fc_n_ref[...] = (fc / fc_nrm).astype(fc_n_ref.dtype)


def prepare_inference_params(params):
    """Fold eval-mode BN into the Linear, transpose and lane-pad.

    Do this ONCE per checkpoint and cache the result; do not redo per call.
    Returns (wt_folded (C, HdP), b_folded (1, HdP), hidden_dim).
    """
    w = params["fc_w"]                                   # (Hd, C)
    b = params["fc_b"]                                   # (Hd,)
    scale = params["bn_gamma"] / jnp.sqrt(params["bn_rvar"] + BN_EPS)
    w_fold = w * scale[:, None]                          # (Hd, C)
    b_fold = (b - params["bn_rmean"]) * scale + params["bn_beta"]

    hd, c = w.shape
    hd_pad = max(LANE, ((hd + LANE - 1) // LANE) * LANE)
    wt = jnp.zeros((c, hd_pad), jnp.float32).at[:, :hd].set(w_fold.T)
    bp = jnp.zeros((1, hd_pad), jnp.float32).at[:, :hd].set(b_fold)
    return wt, bp, hd


@functools.partial(jax.jit, static_argnames=("hidden_dim",))
def single_modal_net_forward(x_nchw, wt_folded, b_folded, hidden_dim):
    """Eval-mode forward: returns (l2norm(pool), l2norm(fc)).

    x_nchw: (B, feat_dim, H, W) float32 -- output of the (not reproduced) trunk.
    """
    B, C, H, W = x_nchw.shape
    S = H * W
    # Channels-last at the trunk boundary: (B, S, C) puts C on the lane axis.
    # (In a real pipeline the trunk would emit NHWC and this transpose vanishes.)
    x = jnp.transpose(x_nchw.reshape(B, C, S), (0, 2, 1))

    hd_pad = wt_folded.shape[1]

    # Batch block sized against a double-buffered VMEM budget (v7x-safe).
    input_budget = 24 * 1024 * 1024
    row_bytes = S * C * x.dtype.itemsize
    tb = max(1, min(B, input_budget // (2 * row_bytes)))
    if tb < B:
        tb = max(8, (tb // 8) * 8)       # keep output sublane dim aligned
    grid = (pl.cdiv(B, tb),)

    pool_n, fc_n_pad = pl.pallas_call(
        _single_modal_kernel,
        out_shape=(
            jax.ShapeDtypeStruct((B, C), x.dtype),
            jax.ShapeDtypeStruct((B, hd_pad), x.dtype),
        ),
        grid_spec=pltpu.PrefetchScalarGridSpec(
            num_scalar_prefetch=0,
            grid=grid,
            in_specs=[
                pl.BlockSpec((tb, S, C), lambda i: (i, 0, 0)),
                pl.BlockSpec((C, hd_pad), lambda i: (0, 0)),   # resident weight
                pl.BlockSpec((1, hd_pad), lambda i: (0, 0)),   # resident bias
            ],
            out_specs=(
                pl.BlockSpec((tb, C), lambda i: (i, 0)),
                pl.BlockSpec((tb, hd_pad), lambda i: (i, 0)),
            ),
        ),
        compiler_params=pltpu.CompilerParams(
            dimension_semantics=("parallel",),
            vmem_limit_bytes=64 * 1024 * 1024,
        ),
    )(x, wt_folded, b_folded)

    # Slice the lane-padding (zero columns) back off the fc embedding.
    return pool_n, fc_n_pad[:, :hidden_dim]


def init_params(key, feat_dim, hidden_dim):
    """Deterministic init mirroring weights_init_kaiming on FeatureBlock."""
    k_w, k_g = jax.random.split(key)
    # Linear: kaiming_normal_(a=0, mode='fan_out') -> std = sqrt(2 / out_features)
    std = (2.0 / hidden_dim) ** 0.5
    fc_w = std * jax.random.normal(k_w, (hidden_dim, feat_dim), jnp.float32)
    fc_b = jnp.zeros((hidden_dim,), jnp.float32)
    # BatchNorm1d: weight ~ N(1, 0.01), bias = 0, running stats at defaults
    bn_gamma = 1.0 + 0.01 * jax.random.normal(k_g, (hidden_dim,), jnp.float32)
    bn_beta = jnp.zeros((hidden_dim,), jnp.float32)
    bn_rmean = jnp.zeros((hidden_dim,), jnp.float32)
    bn_rvar = jnp.ones((hidden_dim,), jnp.float32)
    return dict(fc_w=fc_w, fc_b=fc_b, bn_gamma=bn_gamma, bn_beta=bn_beta,
                bn_rmean=bn_rmean, bn_rvar=bn_rvar)


if __name__ == "__main__":
    key = jax.random.PRNGKey(0)
    k_x, k_p = jax.random.split(key)

    # arch='resnet18' => feat_dim=512; small spatial/hidden for the demo.
    B, FEAT_DIM, H, W = 2, 512, 4, 4
    HIDDEN_DIM = 32

    x = jax.random.normal(k_x, (B, FEAT_DIM, H, W), jnp.float32)
    params = init_params(k_p, FEAT_DIM, HIDDEN_DIM)

    # Fold/transpose/pad the FeatureBlock weights once (cached across calls).
    wt_folded, b_folded, hd = prepare_inference_params(params)

    pool_n, fc_n = single_modal_net_forward(x, wt_folded, b_folded, hd)
    jax.block_until_ready((pool_n, fc_n))

    assert pool_n.shape == (B, FEAT_DIM) and fc_n.shape == (B, HIDDEN_DIM)

    # sanity: reference in plain JAX (unfused Linear + eval-BN path)
    pool_ref = jnp.mean(x.reshape(B, FEAT_DIM, -1), axis=-1)
    fc_ref = pool_ref @ params["fc_w"].T + params["fc_b"]
    fc_ref = ((fc_ref - params["bn_rmean"]) /
              jnp.sqrt(params["bn_rvar"] + BN_EPS) * params["bn_gamma"]
              + params["bn_beta"])
    l2 = lambda v: v / jnp.maximum(
        jnp.linalg.norm(v, axis=1, keepdims=True), L2_EPS)
    assert jnp.allclose(pool_n, l2(pool_ref), atol=1e-5)
    assert jnp.allclose(fc_n, l2(fc_ref), atol=1e-5)

    print("KERNEL_OK")
</pallas_src>

<mosaic_0001>
module attributes {stable_mosaic.version = 11 : i64} {
  func.func @_single_modal_kernel(%arg0: i32, %arg1: memref<2x16x512xf32, #tpu.memory_space<vmem>>, %arg2: memref<512x128xf32, #tpu.memory_space<vmem>>, %arg3: memref<1x128xf32, #tpu.memory_space<vmem>>, %arg4: memref<2x512xf32, #tpu.memory_space<vmem>>, %arg5: memref<2x128xf32, #tpu.memory_space<vmem>>) attributes {dimension_semantics = [#tpu.dimension_semantics<parallel>], iteration_bounds = array<i64: 1>, scalar_prefetch = 0 : i64, scratch_operands = 0 : i64, tpu.core_type = #tpu.core_type<tc>, window_params = [{transform_indices = @transform_0, window_bounds = array<i64: 2, 16, 512>}, {pipeline_mode = #tpu.pipeline_mode<synchronous>, transform_indices = @transform_1, window_bounds = array<i64: 512, 128>}, {pipeline_mode = #tpu.pipeline_mode<synchronous>, transform_indices = @transform_2, window_bounds = array<i64: 1, 128>}, {transform_indices = @transform_3, window_bounds = array<i64: 2, 512>}, {transform_indices = @transform_4, window_bounds = array<i64: 2, 128>}]} {
    %c0 = arith.constant 0 : index
    %c0_0 = arith.constant 0 : index
    %c0_1 = arith.constant 0 : index
    %0 = vector.load %arg1[%c0, %c0_0, %c0_1] : memref<2x16x512xf32, #tpu.memory_space<vmem>>, vector<2x16x512xf32>
    %cst = arith.constant dense<0.000000e+00> : vector<2x512xf32>
    %1 = vector.multi_reduction <add>, %0, %cst [1] : vector<2x16x512xf32> to vector<2x512xf32>
    %cst_2 = arith.constant 1.600000e+01 : f32
    %2 = vector.broadcast %cst_2 : f32 to vector<2x512xf32>
    %3 = arith.divf %1, %2 : vector<2x512xf32>
    %c0_3 = arith.constant 0 : index
    %c0_4 = arith.constant 0 : index
    %4 = vector.load %arg2[%c0_3, %c0_4] : memref<512x128xf32, #tpu.memory_space<vmem>>, vector<512x128xf32>
    %cst_5 = arith.constant dense<0.000000e+00> : vector<2x128xf32>
    %5 = tpu.matmul %3, %4, %cst_5 {dimension_numbers = #tpu.dot_dimension_numbers<[1], [0], [0], [1], [0, 0, 1, 1], [], []>} : vector<2x512xf32>, vector<512x128xf32>, vector<2x128xf32> -> vector<2x128xf32>
    %c0_6 = arith.constant 0 : index
    %c0_7 = arith.constant 0 : index
    %6 = vector.load %arg3[%c0_6, %c0_7] : memref<1x128xf32, #tpu.memory_space<vmem>>, vector<1x128xf32>
    %7 = vector.broadcast %6 : vector<1x128xf32> to vector<2x128xf32>
    %8 = arith.addf %5, %7 : vector<2x128xf32>
    %9 = arith.mulf %3, %3 : vector<2x512xf32>
    %cst_8 = arith.constant dense<0.000000e+00> : vector<2xf32>
    %10 = vector.multi_reduction <add>, %9, %cst_8 [1] : vector<2x512xf32> to vector<2xf32>
    %11 = vector.shape_cast %10 : vector<2xf32> to vector<2x1xf32>
    %12 = math.sqrt %11 : vector<2x1xf32>
    %cst_9 = arith.constant 9.99999996E-13 : f32
    %13 = vector.broadcast %cst_9 : f32 to vector<2x1xf32>
    %14 = arith.maximumf %12, %13 : vector<2x1xf32>
    %15 = arith.mulf %8, %8 : vector<2x128xf32>
    %cst_10 = arith.constant dense<0.000000e+00> : vector<2xf32>
    %16 = vector.multi_reduction <add>, %15, %cst_10 [1] : vector<2x128xf32> to vector<2xf32>
    %17 = vector.shape_cast %16 : vector<2xf32> to vector<2x1xf32>
    %18 = math.sqrt %17 : vector<2x1xf32>
    %cst_11 = arith.constant 9.99999996E-13 : f32
    %19 = vector.broadcast %cst_11 : f32 to vector<2x1xf32>
    %20 = arith.maximumf %18, %19 : vector<2x1xf32>
    %21 = vector.broadcast %14 : vector<2x1xf32> to vector<2x512xf32>
    %22 = arith.divf %3, %21 : vector<2x512xf32>
    %c0_12 = arith.constant 0 : index
    %c0_13 = arith.constant 0 : index
    %23 = vector.load %arg4[%c0_12, %c0_13] : memref<2x512xf32, #tpu.memory_space<vmem>>, vector<2x512xf32>
    tpu.vector_store %arg4[%c0_12, %c0_13], %22 {strides = array<i32>} : memref<2x512xf32, #tpu.memory_space<vmem>>, vector<2x512xf32>,
    %24 = vector.broadcast %20 : vector<2x1xf32> to vector<2x128xf32>
    %25 = arith.divf %8, %24 : vector<2x128xf32>
    %c0_14 = arith.constant 0 : index
    %c0_15 = arith.constant 0 : index
    %26 = vector.load %arg5[%c0_14, %c0_15] : memref<2x128xf32, #tpu.memory_space<vmem>>, vector<2x128xf32>
    tpu.vector_store %arg5[%c0_14, %c0_15], %25 {strides = array<i32>} : memref<2x128xf32, #tpu.memory_space<vmem>>, vector<2x128xf32>,
    return
  }
  func.func @transform_0(%arg0: i32) -> (i32, i32, i32) {
    %c0_i32 = arith.constant 0 : i32
    %c0_i32_0 = arith.constant 0 : i32
    %c0_i32_1 = arith.constant 0 : i32
    return %arg0, %c0_i32, %c0_i32_0 : i32, i32, i32
  }
  func.func @transform_1(%arg0: i32) -> (i32, i32) {
    %c0_i32 = arith.constant 0 : i32
    %c0_i32_0 = arith.constant 0 : i32
    %c0_i32_1 = arith.constant 0 : i32
    return %c0_i32, %c0_i32_0 : i32, i32
  }
  func.func @transform_2(%arg0: i32) -> (i32, i32) {
    %c0_i32 = arith.constant 0 : i32
    %c0_i32_0 = arith.constant 0 : i32
    %c0_i32_1 = arith.constant 0 : i32
    return %c0_i32, %c0_i32_0 : i32, i32
  }
  func.func @transform_3(%arg0: i32) -> (i32, i32) {
    %c0_i32 = arith.constant 0 : i32
    %c0_i32_0 = arith.constant 0 : i32
    return %arg0, %c0_i32 : i32, i32
  }
  func.func @transform_4(%arg0: i32) -> (i32, i32) {
    %c0_i32 = arith.constant 0 : i32
    %c0_i32_0 = arith.constant 0 : i32
    return %arg0, %c0_i32 : i32, i32
  }
}

</mosaic_0001>

<bundles_post_ra>
// kernel: single_modal_net_forward.1
= control target key start
LH: loop header
LB: loop body
LE: loop exit
PB: predicated region body
PF: predicated region fallthrough
CT: control target
= control target key end

     0   :  { %10 = vsyncpa [#allocation3], 0  ;;  %s751_s0 = inlined_call_operand.vmem [shape: f32[2,16,512], index: 0, kind: input, shape index: {}]   ;;  %s752_s1 = inlined_call_operand.hbm [shape: f32[512,128], index: 1, kind: input, shape index: {}]   ;;  %s753_s2 = inlined_call_operand.vmem [shape: f32[1,128], index: 2, kind: input, shape index: {}]   ;;  %s754_s3 = inlined_call_operand.hbm [shape: f32[2,512], index: 3, kind: output, shape index: {0}]   ;;  %s755_s4 = inlined_call_operand.hbm [shape: f32[2,128], index: 4, kind: output, shape index: {1}]  }
   0x1   :  { %11 = vsyncpa [#allocation4], 0 }
   0x2   :  { %12 = vsyncpa [#allocation7], 0  ;;  %s19_s17 = sshll.u32 %s752_s1, 4  ;;  %s572_s18 = smov [#allocation2]   ;;  %s20_s17 = int_to_ptr.hbm [resolvable:$true] %s19_s17 }
   0x3   :  { %s21_s19 = sshll.u32 %s572_s18, 4  ;;  %s573_s20 = smov 128   ;;  %s22_s19 = int_to_ptr.vmem [resolvable:$true] %s21_s19 }
   0x4   :  { %s574_s21 = smov 8  }
   0x5   :  { %27 = dma.hbm_to_vmem [thread:$0]  %s20_s17, 8192, %s22_s19, [#allocation3], %s573_s20, %s573_s20, %s574_s21  }
   0x6   :  { %566 = dma.done.wait [#allocation3], 8192  }
   0x7   :  { %567 = vsyncadd [#allocation3], 4294959104  ;;  %v168_v0 = vld [vmem:[#allocation2 + $0x178] sm:$0xff]  ;;  %v167_v2 = vld [vmem:[#allocation2 + $0x170] sm:$0xff]  ;;  %v575_v6 = vmov 16.0   ;;  %vm197_vm1 = vcmask 1041409  }
   0x8   :  { %v136_v1 = vld [vmem:[#allocation2 + $0x78] sm:$0xff]  ;;  %246 = vmatpush.msra.mxu2 %v168_v0  ;;  %v135_v4 = vld [vmem:[#allocation2 + $0x70] sm:$0xff]  ;;  %482 = vrcp.f32 %v575_v6  ;;  %v166_v7 = vld [vmem:[#allocation2 + $0x168] sm:$0xff]  ;;  %vm310_vm2 = vcmask 1041408   ;;  %vm405_vm13 = vcmask 1045508   ;;  %vm407_vm14 = vcmask 1043456  }
   0x9   :  { %206 = vmatpush.msra.mxu0 %v136_v1  ;;  %v184_v3 = vld [vmem:[#allocation2 + $0x1f8] sm:$0xff]  ;;  %v183_v8 = vld [vmem:[#allocation2 + $0x1f0] sm:$0xff]  ;;  %v134_v9 = vld [vmem:[#allocation2 + $0x68] sm:$0xff]  ;;  %vm418_vm15 = vcmask 1043459   ;;  %s449_s30 = sshll.u32 %s754_s3, 4  ;;  %s577_s3 = smov [#allocation6]   ;;  %s450_s30 = int_to_ptr.hbm [resolvable:$true] %s449_s30 }
   0xa   :  { %v152_v5 = vld [vmem:[#allocation2 + $0xf8] sm:$0xff]  ;;  %266 = vmatpush.msra.mxu3 %v184_v3  ;;  %247 = vmatpush.msra.mxu2 %v167_v2  ;;  %v151_v10 = vld [vmem:[#allocation2 + $0xf0] sm:$0xff]  ;;  %v182_v11 = vld [vmem:[#allocation2 + $0x1e8] sm:$0xff]  ;;  %s458_s5 = sshll.u32 %s577_s3, 4  ;;  %s460_s8 = sshll.u32 %s755_s4, 4  ;;  %s459_s5 = int_to_ptr.vmem [resolvable:$true] %s458_s5  ;;  %s461_s8 = int_to_ptr.hbm [resolvable:$true] %s460_s8 }
   0xb   :  { %226 = vmatpush.msra.mxu1 %v152_v5  ;;  %207 = vmatpush.msra.mxu0 %v135_v4  ;;  %v165_v12 = vld [vmem:[#allocation2 + $0x160] sm:$0xff]  ;;  %v150_v14 = vld [vmem:[#allocation2 + $0xe8] sm:$0xff]  ;;  %v164_v17 = vld [vmem:[#allocation2 + $0x158] sm:$0xff] }
   0xc   :  { %267 = vmatpush.msra.mxu3 %v183_v8  ;;  %v133_v13 = vld [vmem:[#allocation2 + $0x60] sm:$0xff]  ;;  %248 = vmatpush.msra.mxu2 %v166_v7  ;;  %v132_v18 = vld [vmem:[#allocation2 + $0x58] sm:$0xff]  ;;  %v163_v22 = vld [vmem:[#allocation2 + $0x150] sm:$0xff] }
   0xd   :  { %227 = vmatpush.msra.mxu1 %v151_v10  ;;  %208 = vmatpush.msra.mxu0 %v134_v9  ;;  %v181_v15 = vld [vmem:[#allocation2 + $0x1e0] sm:$0xff]  ;;  %v180_v20 = vld [vmem:[#allocation2 + $0x1d8] sm:$0xff]  ;;  %v131_v23 = vld [vmem:[#allocation2 + $0x50] sm:$0xff] }
   0xe   :  { %v149_v16 = vld [vmem:[#allocation2 + $0xe0] sm:$0xff]  ;;  %268 = vmatpush.msra.mxu3 %v182_v11  ;;  %v606_v19 = vpop.eup %482  ;;  %249 = vmatpush.msra.mxu2 %v165_v12  ;;  %v148_v21 = vld [vmem:[#allocation2 + $0xd8] sm:$0xff]  ;;  %v179_v24 = vld [vmem:[#allocation2 + $0x1d0] sm:$0xff] }
   0xf   :  { %228 = vmatpush.msra.mxu1 %v150_v14  ;;  %209 = vmatpush.msra.mxu0 %v133_v13  ;;  %v147_v25 = vld [vmem:[#allocation2 + $0xd0] sm:$0xff]  ;;  %v162_v26 = vld [vmem:[#allocation2 + $0x148] sm:$0xff]  ;;  %v107_v28 = vmul.f32 16.0, %v606_v19  ;;  %v161_v31 = vld [vmem:[#allocation2 + $0x140] sm:$0xff]  ;;  %vm111_vm0 = vweird.f32 %v606_v19 }
  0x10   :  { %269 = vmatpush.msra.mxu3 %v181_v15  ;;  %250 = vmatpush.msra.mxu2 %v164_v17  ;;  %v130_v27 = vld [vmem:[#allocation2 + $0x48] sm:$0xff]  ;;  %v129_v32 = vld [vmem:[#allocation2 + $0x40] sm:$0xff]  ;;  %v160_v35 = vld [vmem:[#allocation2 + $0x138] sm:$0xff] }
  0x11   :  { %229 = vmatpush.msra.mxu1 %v149_v16  ;;  %210 = vmatpush.msra.mxu0 %v132_v18  ;;  %v178_v29 = vld [vmem:[#allocation2 + $0x1c8] sm:$0xff]  ;;  %v177_v33 = vld [vmem:[#allocation2 + $0x1c0] sm:$0xff]  ;;  %v128_v36 = vld [vmem:[#allocation2 + $0x38] sm:$0xff]  ;;  %v108_v37 = vsub.f32 1.0, %v107_v28 }
  0x12   :  { %270 = vmatpush.msra.mxu3 %v180_v20  ;;  %251 = vmatpush.msra.mxu2 %v163_v22  ;;  %v146_v30 = vld [vmem:[#allocation2 + $0xc8] sm:$0xff]  ;;  %v145_v34 = vld [vmem:[#allocation2 + $0xc0] sm:$0xff]  ;;  %v176_v38 = vld [vmem:[#allocation2 + $0x1b8] sm:$0xff] }
  0x13   :  { %230 = vmatpush.msra.mxu1 %v148_v21  ;;  %211 = vmatpush.msra.mxu0 %v131_v23  ;;  %v144_v39 = vld [vmem:[#allocation2 + $0xb8] sm:$0xff]  ;;  %v159_v40 = vld [vmem:[#allocation2 + $0x130] sm:$0xff]  ;;  %v158_v42 = vld [vmem:[#allocation2 + $0x128] sm:$0xff]  ;;  %v109_v48 = vmul.f32 %v606_v19, %v108_v37 }
  0x14   :  { %271 = vmatpush.msra.mxu3 %v179_v24  ;;  %252 = vmatpush.msra.mxu2 %v162_v26  ;;  %v127_v41 = vld [vmem:[#allocation2 + $0x30] sm:$0xff]  ;;  %v126_v45 = vld [vmem:[#allocation2 + $0x28] sm:$0xff]  ;;  %v157_v46 = vld [vmem:[#allocation2 + $0x120] sm:$0xff] }
  0x15   :  { %231 = vmatpush.msra.mxu1 %v147_v25  ;;  %212 = vmatpush.msra.mxu0 %v130_v27  ;;  %v175_v43 = vld [vmem:[#allocation2 + $0x1b0] sm:$0xff]  ;;  %v174_v47 = vld [vmem:[#allocation2 + $0x1a8] sm:$0xff]  ;;  %v125_v49 = vld [vmem:[#allocation2 + $0x20] sm:$0xff]  ;;  %v110_v1 = vadd.f32 %v606_v19, %v109_v48 }
  0x16   :  { %272 = vmatpush.msra.mxu3 %v178_v29  ;;  %253 = vmatpush.msra.mxu2 %v161_v31  ;;  %v143_v44 = vld [vmem:[#allocation2 + $0xb0] sm:$0xff]  ;;  %v142_v50 = vld [vmem:[#allocation2 + $0xa8] sm:$0xff]  ;;  %v173_v51 = vld [vmem:[#allocation2 + $0x1a0] sm:$0xff] }
  0x17   :  { %232 = vmatpush.msra.mxu1 %v146_v30  ;;  %213 = vmatpush.msra.mxu0 %v129_v32  ;;  %v156_v52 = vld [vmem:[#allocation2 + $0x118] sm:$0xff]  ;;  %v36_v54 = vld [vmem:[%s751_s0 + $0x10] sm:$0xff]  ;;  %v141_v57 = vld [vmem:[#allocation2 + $0xa0] sm:$0xff]  ;;  %v657_v26 = vsel %vm111_vm0, %v606_v19, %v110_v1  ;;  %vm420_vm0 = vcmask 1045509  }
  0x18   :  { %273 = vmatpush.msra.mxu3 %v177_v33  ;;  %254 = vmatpush.msra.mxu2 %v160_v35  ;;  %v124_v53 = vld [vmem:[#allocation2 + $0x18] sm:$0xff]  ;;  %v40_v55 = vld [vmem:[%s751_s0 + $0x30] sm:$0xff]  ;;  %v34_v2 = vld [vmem:[%s751_s0] sm:$0xff] }
  0x19   :  { %233 = vmatpush.msra.mxu1 %v145_v34  ;;  %214 = vmatpush.msra.mxu0 %v128_v36  ;;  %v44_v56 = vld [vmem:[%s751_s0 + $0x50] sm:$0xff]  ;;  %v172_v58 = vld [vmem:[#allocation2 + $0x198] sm:$0xff]  ;;  %v64_v60 = vadd.f32 %v40_v55, %v36_v54  ;;  %v38_v3 = vld [vmem:[%s751_s0 + $0x20] sm:$0xff] }
  0x1a   :  { %274 = vmatpush.msra.mxu3 %v176_v38  ;;  %255 = vmatpush.msra.mxu2 %v159_v40  ;;  %v48_v59 = vld [vmem:[%s751_s0 + $0x70] sm:$0xff]  ;;  %v140_v63 = vld [vmem:[#allocation2 + $0x98] sm:$0xff]  ;;  %v42_v6 = vld [vmem:[%s751_s0 + $0x40] sm:$0xff]  ;;  %v50_v8 = vadd.f32 %v38_v3, %v34_v2 }
  0x1b   :  { %234 = vmatpush.msra.mxu1 %v144_v39  ;;  %215 = vmatpush.msra.mxu0 %v127_v41  ;;  %v155_v61 = vld [vmem:[#allocation2 + $0x110] sm:$0xff]  ;;  %v92_v0 = vadd.f32 %v48_v59, %v44_v56  ;;  %v65_v5 = vrot.slane %v64_v60, 4  ;;  %v46_v7 = vld [vmem:[%s751_s0 + $0x60] sm:$0xff]  ;;  %v37_v9 = vld [vmem:[%s751_s0 + $0x18] sm:$0xff] }
  0x1c   :  { %275 = vmatpush.msra.mxu3 %v175_v43  ;;  %256 = vmatpush.msra.mxu2 %v158_v42  ;;  %v123_v62 = vld [vmem:[#allocation2 + $0x10] sm:$0xff]  ;;  %v154_v10 = vld [vmem:[#allocation2 + $0x108] sm:$0xff]  ;;  %v78_v13 = vadd.f32 %v46_v7, %v42_v6  ;;  %v41_v14 = vld [vmem:[%s751_s0 + $0x38] sm:$0xff]  ;;  %v51_v20 = vrot.slane %v50_v8, 4 }
  0x1d   :  { %235 = vmatpush.msra.mxu1 %v143_v44  ;;  %216 = vmatpush.msra.mxu0 %v126_v45  ;;  %v171_v4 = vld [vmem:[#allocation2 + $0x190] sm:$0xff]  ;;  %v122_v11 = vld [vmem:[#allocation2 + $0x8] sm:$0xff]  ;;  %v93_v12 = vrot.slane %v92_v0, 4  ;;  %v45_v15 = vld [vmem:[%s751_s0 + $0x58] sm:$0xff]  ;;  %v66_v18 = vadd.f32 %v65_v5, %v64_v60  ;;  %v71_v21 = vadd.f32 %v41_v14, %v37_v9 }
  0x1e   :  { %276 = vmatpush.msra.mxu3 %v174_v47  ;;  %257 = vmatpush.msra.mxu2 %v157_v46  ;;  %v49_v16 = vld [vmem:[%s751_s0 + $0x78] sm:$0xff]  ;;  %v139_v17 = vld [vmem:[#allocation2 + $0x90] sm:$0xff]  ;;  %v35_v23 = vld [vmem:[%s751_s0 + $0x8] sm:$0xff]  ;;  %v79_v27 = vrot.slane %v78_v13, 4  ;;  %v52_v34 = vadd.f32 %v51_v20, %v50_v8 }
  0x1f   :  { %236 = vmatpush.msra.mxu1 %v142_v50  ;;  %217 = vmatpush.msra.mxu0 %v125_v49  ;;  %v99_v22 = vadd.f32 %v49_v16, %v45_v15  ;;  %v39_v24 = vld [vmem:[%s751_s0 + $0x28] sm:$0xff]  ;;  %v94_v25 = vadd.f32 %v93_v12, %v92_v0  ;;  %v67_v32 = vrot.slane %v66_v18, 2  ;;  %v72_v35 = vrot.slane %v71_v21, 4  ;;  %v153_v36 = vld [vmem:[#allocation2 + $0x100] sm:$0xff] }
  0x20   :  { %277 = vmatpush.msra.mxu3 %v173_v51  ;;  %258 = vmatpush.msra.mxu2 %v156_v52  ;;  %v43_v28 = vld [vmem:[%s751_s0 + $0x48] sm:$0xff]  ;;  %v57_v30 = vadd.f32 %v39_v24, %v35_v23  ;;  %v121_v38 = vld [vmem:[#allocation2] sm:$0xff]  ;;  %v80_v39 = vadd.f32 %v79_v27, %v78_v13  ;;  %v53_v44 = vrot.slane %v52_v34, 2 }
  0x21   :  { %237 = vmatpush.msra.mxu1 %v141_v57  ;;  %218 = vmatpush.msra.mxu0 %v124_v53  ;;  %v47_v29 = vld [vmem:[%s751_s0 + $0x68] sm:$0xff]  ;;  %v100_v19 = vrot.slane %v99_v22, 4  ;;  %v95_v37 = vrot.slane %v94_v25, 2  ;;  %v68_v42 = vadd.f32 %v67_v32, %v66_v18  ;;  %v169_v43 = vld [vmem:[#allocation2 + $0x180] sm:$0xff]  ;;  %v73_v45 = vadd.f32 %v72_v35, %v71_v21 }
  0x22   :  { %278 = vmatpush.msra.mxu3 %v172_v58  ;;  %259 = vmatpush.msra.mxu2 %v155_v61  ;;  %v170_v31 = vld [vmem:[#allocation2 + $0x188] sm:$0xff]  ;;  %v58_v40 = vrot.slane %v57_v30, 4  ;;  %v85_v41 = vadd.f32 %v47_v29, %v43_v28  ;;  %v137_v47 = vld [vmem:[#allocation2 + $0x80] sm:$0xff]  ;;  %v81_v49 = vrot.slane %v80_v39, 2  ;;  %v54_v53 = vadd.f32 %v53_v44, %v52_v34 }
  0x23   :  { %238 = vmatpush.msra.mxu1 %v140_v63  ;;  %219 = vmatpush.msra.mxu0 %v123_v62  ;;  %v138_v33 = vld [vmem:[#allocation2 + $0x88] sm:$0xff]  ;;  %v101_v46 = vadd.f32 %v100_v19, %v99_v22  ;;  %v96_v48 = vadd.f32 %v95_v37, %v94_v25  ;;  %v69_v52 = vrot.slane %v68_v42, 1  ;;  %v74_v54 = vrot.slane %v73_v45, 2 }
  0x24   :  { %279 = vmatpush.msra.mxu3 %v171_v4  ;;  %260 = vmatpush.msra.mxu2 %v154_v10  ;;  %v59_v50 = vadd.f32 %v58_v40, %v57_v30  ;;  %v86_v51 = vrot.slane %v85_v41, 4  ;;  %v82_v57 = vadd.f32 %v81_v49, %v80_v39  ;;  %v55_v61 = vrot.slane %v54_v53, 1 }
  0x25   :  { %239 = vmatpush.msra.mxu1 %v139_v17  ;;  %220 = vmatpush.msra.mxu0 %v122_v11  ;;  %v102_v55 = vrot.slane %v101_v46, 2  ;;  %v97_v56 = vrot.slane %v96_v48, 1  ;;  %v70_v60 = vadd.f32 %v69_v52, %v68_v42  ;;  %v75_v62 = vadd.f32 %v74_v54, %v73_v45 }
  0x26   :  { %280 = vmatpush.msra.mxu3 %v170_v31  ;;  %261 = vmatpush.msra.mxu2 %v153_v36  ;;  %v60_v58 = vrot.slane %v59_v50, 2  ;;  %v87_v59 = vadd.f32 %v86_v51, %v85_v41  ;;  %v83_v1 = vrot.slane %v82_v57, 1  ;;  %v56_v5 = vadd.f32 %v55_v61, %v54_v53 }
  0x27   :  { %240 = vmatpush.msra.mxu1 %v138_v33  ;;  %221 = vmatpush.msra.mxu0 %v121_v38  ;;  %v103_v63 = vadd.f32 %v102_v55, %v101_v46  ;;  %v98_v0 = vadd.f32 %v97_v56, %v96_v48  ;;  %v666_v4 = vmul.f32 %v657_v26, %v70_v60  ;;  %v76_v6 = vrot.slane %v75_v62, 1  ;;  %v481_v46 = vld [vmem:[%s753_s2] ss:$0 sm:$0xff]  ;;  %s576_s2 = smov [#allocation5]  }
  0x28   :  { %281 = vmatpush.msra.mxu3 %v169_v43  ;;  %v61_v2 = vadd.f32 %v60_v58, %v59_v50  ;;  %v88_v3 = vrot.slane %v87_v59, 2  ;;  %v84_v9 = vadd.f32 %v83_v1, %v82_v57  ;;  %v672_v12 = vmul.f32 %v657_v26, %v56_v5  ;;  %s447_s27 = sshll.u32 %s576_s2, 4  ;;  %s448_s27 = int_to_ptr.vmem [resolvable:$true] %s447_s27 }
  0x29   :  { %241 = vmatpush.msra.mxu1 %v137_v47  ;;  %v104_v7 = vrot.slane %v103_v63, 1  ;;  %v669_v8 = vmul.f32 %v657_v26, %v98_v0  ;;  %v77_v13 = vadd.f32 %v76_v6, %v75_v62  ;;  %v288_v15 = vmul.f32 %v666_v4, %v666_v4 }
  0x2a   :  { %v62_v10 = vrot.slane %v61_v2, 1  ;;  %v89_v11 = vadd.f32 %v88_v3, %v87_v59  ;;  %v680_v17 = vmul.f32 %v657_v26, %v84_v9  ;;  %v286_v21 = vmul.f32 %v672_v12, %v672_v12 }
  0x2b   :  { %v105_v14 = vadd.f32 %v104_v7, %v103_v63  ;;  %v200_v16 = vsel %vm197_vm1, %v669_v8, %v666_v4  ;;  %v685_v22 = vmul.f32 %v657_v26, %v77_v13  ;;  %v292_v24 = vmul.f32 %v669_v8, %v669_v8 }
  0x2c   :  { %v63_v18 = vadd.f32 %v62_v10, %v61_v2  ;;  %v90_v20 = vrot.slane %v89_v11, 1  ;;  %262 = vmatmul.f32.vlgmr.msra.gmra.mxu2 %v200_v16  ;;  %v198_v25 = vsel %vm197_vm1, %v680_v17, %v672_v12  ;;  %v290_v27 = vmul.f32 %v680_v17, %v680_v17 }
  0x2d   :  { %v688_v23 = vmul.f32 %v657_v26, %v105_v14  ;;  %222 = vmatmul.f32.vlgmr.msra.gmra.mxu0 %v198_v25  ;;  %v289_v31 = vmul.f32 %v685_v22, %v685_v22  ;;  %v304_v37 = vsel %vm197_vm1, %v292_v24, %v288_v15 }
  0x2e   :  { %v91_v28 = vadd.f32 %v90_v20, %v89_v11  ;;  %v698_v29 = vmul.f32 %v657_v26, %v63_v18  ;;  %v302_v35 = vsel %vm197_vm1, %v290_v27, %v286_v21  ;;  %v314_v41 = vsel %vm310_vm2, %v304_v37, 0.0 }
  0x2f   :  { %v201_v30 = vsel %vm197_vm1, %v688_v23, %v685_v22  ;;  %v293_v34 = vmul.f32 %v688_v23, %v688_v23 }
  0x30   :  { %282 = vmatmul.f32.vlgmr.msra.gmra.mxu3 %v201_v30  ;;  %v706_v32 = vmul.f32 %v657_v26, %v91_v28  ;;  %v287_v33 = vmul.f32 %v698_v29, %v698_v29  ;;  %v311_v26 = vsel %vm310_vm2, %v302_v35, 0.0 }
  0x31   :  { %v305_v39 = vsel %vm197_vm1, %v293_v34, %v289_v31 }
  0x32   :  { %v199_v19 = vsel %vm197_vm1, %v706_v32, %v698_v29  ;;  %v291_v36 = vmul.f32 %v706_v32, %v706_v32  ;;  %v316_v43 = vsel %vm310_vm2, %v305_v39, 0.0 }
  0x33   :  { %242 = vmatmul.f32.vlgmr.msra.gmra.mxu1 %v199_v19 }
  0x34   :  { %v303_v38 = vsel %vm197_vm1, %v291_v36, %v287_v33 }
  0x35   :  { %v312_v40 = vsel %vm310_vm2, %v303_v38, 0.0 }
  0x36   :  { %v313_v42 = vadd.f32 %v312_v40, %v311_v26 }
  0x38   :  { %v315_v44 = vadd.f32 %v314_v41, %v313_v42 }
  0x3a   :  { %v317_v45 = vadd.f32 %v316_v43, %v315_v44 }
  0x3c   :  { %318 = vadd.xlane.f32.xlu0 %v317_v45 }
  0xaa   :  { %v223_v47 = vpop.f32.mrf.mxu0 }
  0xab   :  { %v224_v48 = vadd.f32 %v481_v46, %v223_v47 }
  0xaf   :  { %v263_v50 = vpop.f32.mrf.mxu2  ;;  %v319_v57 = vpop.xlane.xlu0 %318 }
  0xb0   :  { %v243_v49 = vpop.f32.mrf.mxu1  ;;  %484 = vrsqrt.f32 %v319_v57  ;;  %vm327_vm3 = vcmp.eq.f32.partialorder %v319_v57, inf  ;;  %v330_v1 = vand.u32 2147483648, %v319_v57  ;;  %vm329_vm4 = vcmp.eq.f32.partialorder %v319_v57, 0.0 }
  0xb1   :  { %v244_v51 = vadd.f32 %v243_v49, %v224_v48 }
  0xb3   :  { %v264_v52 = vadd.f32 %v263_v50, %v244_v51  ;;  %v283_v53 = vpop.f32.mrf.mxu3 }
  0xb5   :  { %v728_v54 = vadd.f32 %v283_v53, %v264_v52 }
  0xb6   :  { %v485_v58 = vpop.eup %484 }
  0xb7   :  { %v333_v55 = vmul.f32 %v728_v54, %v728_v54  ;;  %v321_v59 = vmul.f32 %v485_v58, %v319_v57 }
  0xb9   :  { %v334_v56 = vsel %vm310_vm2, %v333_v55, 0.0  ;;  %v322_v60 = vmul.f32 %v485_v58, %v321_v59 }
  0xba   :  { %335 = vadd.xlane.f32.xlu0 %v334_v56 }
  0xbb   :  { %v323_v61 = vmul.f32 0.5, %v322_v60 }
  0xbd   :  { %v324_v62 = vsub.f32 1.5, %v323_v61 }
  0xbf   :  { %v325_v63 = vmul.f32 %v485_v58, %v324_v62 }
  0xc1   :  { %v326_v0 = vmul.f32 %v325_v63, %v319_v57 }
  0xc3   :  { %v328_v2 = vsel %vm327_vm3, %v319_v57, %v326_v0  ;;  %vm422_vm3 = vcmask 1047559  }
  0xc4   :  { %v331_v3 = vsel %vm329_vm4, %v330_v1, %v328_v2 }
  0xc5   :  { %v332_v5 = vmax.f32 %v331_v3, 1e-12 }
  0xc7   :  { %v351_v6 = vrot.slane %v332_v5, 1  ;;  %v365_v21 = vand.u32 2147483648, %v332_v5  ;;  %vm359_vm8 = vweird.f32 %v332_v5  ;;  %v363_v28 = vand.u32 2147483647, %v332_v5 }
  0xc9   :  { %486 = vrcp.f32 %v351_v6  ;;  %v383_v16 = vand.u32 2147483648, %v351_v6  ;;  %vm377_vm5 = vweird.f32 %v351_v6  ;;  %v381_v24 = vand.u32 2147483647, %v351_v6 }
  0xca   :  { %488 = vrcp.f32 %v332_v5  ;;  %v366_v30 = vor.u32 1.1754944e-38, %v365_v21  ;;  %vm364_vm12 = vcmp.eq.f32.partialorder %v363_v28, 8.507059e+37 }
  0xcb   :  { %v384_v25 = vor.u32 1.1754944e-38, %v383_v16  ;;  %vm382_vm11 = vcmp.eq.f32.partialorder %v381_v24, 8.507059e+37 }
  0xcf   :  { %v487_v7 = vpop.eup %486 }
  0xd0   :  { %v489_v9 = vpop.eup %488  ;;  %v373_v10 = vmul.f32 %v487_v7, %v351_v6  ;;  %vm378_vm6 = vweird.f32 %v487_v7 }
  0xd1   :  { %v355_v11 = vmul.f32 %v489_v9, %v332_v5  ;;  %vm379_vm7 = vmor %vm377_vm5, %vm378_vm6  ;;  %vm360_vm9 = vweird.f32 %v489_v9 }
  0xd2   :  { %v374_v13 = vsub.f32 1.0, %v373_v10  ;;  %vm361_vm10 = vmor %vm359_vm8, %vm360_vm9 }
  0xd3   :  { %v356_v14 = vsub.f32 1.0, %v355_v11 }
  0xd4   :  { %v375_v15 = vmul.f32 %v487_v7, %v374_v13 }
  0xd5   :  { %v357_v18 = vmul.f32 %v489_v9, %v356_v14 }
  0xd6   :  { %v376_v20 = vadd.f32 %v487_v7, %v375_v15 }
  0xd7   :  { %v358_v27 = vadd.f32 %v489_v9, %v357_v18 }
  0xd8   :  { %v380_v31 = vsel %vm379_vm7, %v487_v7, %v376_v20 }
  0xd9   :  { %v362_v33 = vsel %vm361_vm10, %v489_v9, %v358_v27  ;;  %v385_v34 = vsel %vm382_vm11, %v384_v25, %v380_v31 }
  0xda   :  { %v367_v35 = vsel %vm364_vm12, %v366_v30, %v362_v33  ;;  %v387_v19 = vmul.f32 %v385_v34, %v706_v32  ;;  %v388_v36 = vmul.f32 %v385_v34, %v669_v8  ;;  %v389_v37 = vmul.f32 %v385_v34, %v688_v23 }
  0xdb   :  { %v369_v26 = vmul.f32 %v367_v35, %v698_v29  ;;  %v370_v38 = vmul.f32 %v367_v35, %v666_v4  ;;  %v371_v39 = vmul.f32 %v367_v35, %v685_v22  ;;  %v386_v40 = vmul.f32 %v385_v34, %v680_v17 }
  0xdc   :  { %v401_v41 = vrot.slane %v387_v19, 6  ;;  %v402_v42 = vrot.slane %v388_v36, 4  ;;  %v403_v43 = vrot.slane %v389_v37, 2  ;;  %v368_v44 = vmul.f32 %v367_v35, %v672_v12 }
  0xdd   :  { %v398_v45 = vrot.slane %v369_v26, 6  ;;  %v399_v32 = vrot.slane %v370_v38, 4  ;;  %v400_v46 = vrot.slane %v371_v39, 2 }
  0xde   :  { %v409_v8 = vsel %vm310_vm2, %v386_v40, %v401_v41  ;;  %v410_v23 = vsel %vm405_vm13, %v402_v42, %v403_v43 }
  0xdf   :  { %v404_v29 = vsel %vm310_vm2, %v368_v44, %v398_v45  ;;  %v406_v4 = vsel %vm405_vm13, %v399_v32, %v400_v46  ;;  %v411_v47 = vsel %vm407_vm14, %v409_v8, %v410_v23 }
  0xe0   :  { %v408_v22 = vsel %vm407_vm14, %v404_v29, %v406_v4  ;;  %v416_v48 = vrot.slane %v411_v47, 7 }
  0xe2   :  { %v417_v12 = vsel %vm197_vm1, %v416_v48, %v408_v22 }
  0xe3   :  { %v419_v17 = vsel %vm418_vm15, %v416_v48, %v417_v12 }
  0xe4   :  { %v421_v49 = vsel %vm420_vm0, %v416_v48, %v419_v17 }
  0xe5   :  { %v423_v50 = vsel %vm422_vm3, %v416_v48, %v421_v49 }
  0xe6   :  { %425 = vst [vmem:[#allocation5] sm:$0xff] %v423_v50 }
  0xe7   :  { %452 = dma.vmem_to_hbm [thread:$0]  %s448_s27, 128, %s450_s30, [#allocation4]  }
 0x12d   :  { %v336_v51 = vpop.xlane.xlu0 %335 }
 0x12e   :  { %490 = vrsqrt.f32 %v336_v51  ;;  %vm344_vm2 = vcmp.eq.f32.partialorder %v336_v51, inf  ;;  %v347_v60 = vand.u32 2147483648, %v336_v51  ;;  %vm346_vm1 = vcmp.eq.f32.partialorder %v336_v51, 0.0 }
 0x134   :  { %v491_v52 = vpop.eup %490 }
 0x135   :  { %v338_v53 = vmul.f32 %v491_v52, %v336_v51 }
 0x137   :  { %v339_v55 = vmul.f32 %v491_v52, %v338_v53 }
 0x139   :  { %v340_v56 = vmul.f32 0.5, %v339_v55 }
 0x13b   :  { %v341_v57 = vsub.f32 1.5, %v340_v56 }
 0x13d   :  { %v342_v58 = vmul.f32 %v491_v52, %v341_v57 }
 0x13f   :  { %v343_v59 = vmul.f32 %v342_v58, %v336_v51 }
 0x141   :  { %v345_v61 = vsel %vm344_vm2, %v336_v51, %v343_v59 }
 0x142   :  { %v348_v62 = vsel %vm346_vm1, %v347_v60, %v345_v61 }
 0x143   :  { %v349_v63 = vmax.f32 %v348_v62, 1e-12 }
 0x145   :  { %492 = vrcp.f32 %v349_v63  ;;  %v437_v3 = vand.u32 2147483648, %v349_v63  ;;  %v435_v6 = vand.u32 2147483647, %v349_v63  ;;  %vm431_vm5 = vweird.f32 %v349_v63 }
 0x147   :  { %v438_v9 = vor.u32 1.1754944e-38, %v437_v3  ;;  %vm436_vm7 = vcmp.eq.f32.partialorder %v435_v6, 8.507059e+37 }
 0x14b   :  { %v493_v0 = vpop.eup %492 }
 0x14c   :  { %v427_v1 = vmul.f32 %v493_v0, %v349_v63  ;;  %vm432_vm4 = vweird.f32 %v493_v0 }
 0x14d   :  { %vm433_vm6 = vmor %vm431_vm5, %vm432_vm4 }
 0x14e   :  { %v428_v2 = vsub.f32 1.0, %v427_v1 }
 0x150   :  { %v429_v5 = vmul.f32 %v493_v0, %v428_v2 }
 0x152   :  { %v430_v7 = vadd.f32 %v493_v0, %v429_v5 }
 0x154   :  { %v434_v10 = vsel %vm433_vm6, %v493_v0, %v430_v7 }
 0x155   :  { %v439_v11 = vsel %vm436_vm7, %v438_v9, %v434_v10 }
 0x156   :  { %v440_v13 = vmul.f32 %v439_v11, %v728_v54 }
 0x158   :  { %441 = vst [vmem:[#allocation6] sm:$0x3] %v440_v13 }
 0x159   :  { %463 = dma.vmem_to_hbm [thread:$0]  %s459_s5, 32, %s461_s8, [#allocation7]  }
 0x15a   :  { %568 = dma.done.wait [#allocation4], 128  }
 0x15b   :  { %569 = vsyncadd [#allocation4], 4294967168 }
 0x15c   :  { %570 = dma.done.wait [#allocation7], 32  }
 0x15d   :  { %571 = vsyncadd [#allocation7], 4294967264 }
 0x15e   :  { %472 = vsyncpa [#allocation3], 1 }
 0x15f   :  { %473 = vsyncpa [#allocation4], 1 }
 0x160   :  { %474 = vsyncpa [#allocation7], 1 }

</bundles_post_ra>
